<compile_context>
chip_gen: v5e
topology: v5e:2x2
jax: 0.10.0
libtpu: 0.0.40
codegen_flags: <defaults>
</compile_context>

<pallas_src>
import functools

import jax
import jax.numpy as jnp
from jax.experimental import pallas as pl
from jax.experimental.pallas import tpu as pltpu


def _round_up(a, m):
    return (a + m - 1) // m * m


def highway_kernel(x_ref, w_ref, b_ref, o_ref, *, d_actual):
    Dp = x_ref.shape[-1]

    xv = x_ref[...]                          # load the x tile exactly once
    x_f32 = xv.astype(jnp.float32)
    w = w_ref[...]

    # One fused MXU matmul: (bm, Dp) @ (Dp, 2Dp) -> (bm, 2Dp), f32 accumulation.
    z = jnp.dot(xv.astype(w.dtype), w, preferred_element_type=jnp.float32)
    z = z + b_ref[...].astype(jnp.float32)

    # Transform branch (first Dp columns).  Padded columns give tanh(0)=0 and are
    # gated by g=0 below, so they never leak into real outputs.
    h = jnp.tanh(z[:, :Dp])

    # Gate branch: numerically stable softmax over the *real* feature columns.
    g_logits = z[:, Dp:]
    if d_actual != Dp:
        col = jax.lax.broadcasted_iota(jnp.int32, g_logits.shape, 1)
        g_logits = jnp.where(col < d_actual, g_logits, -jnp.inf)
    g_max = jnp.max(g_logits, axis=-1, keepdims=True)
    g_exp = jnp.exp(g_logits - g_max)
    denom_inv = pl.reciprocal(jnp.sum(g_exp, axis=-1, keepdims=True), approx=True)
    g = g_exp * denom_inv

    # Highway combine: h*g + (1-g)*x == x + g*(h - x)   (one fewer VALU op/elem).
    o_ref[...] = (x_f32 + g * (h - x_f32)).astype(o_ref.dtype)


def highway_mlp(x, w_h, b_h, w_g, b_g, *, block_batch=1024,
                compute_dtype=jnp.bfloat16):
    """x: (B, D).  w_*: (D, D) pre-transposed to (in, out) layout.  b_*: (D,).

    compute_dtype: dtype of the MXU operands (default bf16; accumulation is f32).
    Pass None to keep the weights in x.dtype.
    """
    B, D = x.shape
    out_dtype = x.dtype

    # ---- Pad the feature dim to a lane-dense multiple of 128. ----------------
    Dp = max(_round_up(D, 128), 128)
    dpad = Dp - D

    w_dtype = jnp.dtype(compute_dtype) if compute_dtype is not None else jnp.dtype(x.dtype)
    wh_p = jnp.pad(w_h, ((0, dpad), (0, dpad))).astype(w_dtype)
    wg_p = jnp.pad(w_g, ((0, dpad), (0, dpad))).astype(w_dtype)
    w_fused = jnp.concatenate([wh_p, wg_p], axis=1)                  # (Dp, 2Dp)
    b_fused = jnp.concatenate(
        [jnp.pad(b_h, (0, dpad)), jnp.pad(b_g, (0, dpad))]
    ).reshape(1, 2 * Dp).astype(jnp.float32)

    # ---- Per-generation VMEM budget. -----------------------------------------
    try:
        vmem_cap = int(pltpu.get_tpu_info().vmem_capacity_bytes)
    except Exception:
        vmem_cap = 64 << 20                      # conservative (v7x-sized) default
    vmem_budget = (vmem_cap * 3) // 4            # ~48 MiB on v7x, ~96 MiB on v5e/v6e

    x_item = jnp.dtype(x.dtype).itemsize
    out_item = jnp.dtype(out_dtype).itemsize
    w_bytes = w_fused.size * w_fused.dtype.itemsize     # single-buffered resident
    b_bytes = b_fused.size * 4

    def _vmem_est(bm):
        tiles = 2 * bm * Dp * (x_item + out_item)        # double-buffered x / out tiles
        z_bytes = bm * 2 * Dp * 4                        # f32 matmul result
        inter = 5 * bm * Dp * 4                          # h, g_exp, g, x_f32 + slack
        return w_bytes + b_bytes + tiles + z_bytes + inter + (2 << 20)

    # ---- Batch tiling: fit VMEM, keep >=2 grid steps (megacore), tiny padding. -
    rows8 = _round_up(B, 8)
    bm = min(_round_up(block_batch, 8), rows8)
    if rows8 >= 16:                                  # leave work for v7x's second TC
        bm = min(bm, _round_up(pl.cdiv(rows8, 2), 8))
    while bm > 8 and _vmem_est(bm) > vmem_budget:
        bm -= 8
    n_tiles = max(pl.cdiv(rows8, bm), 2 if rows8 >= 16 else 1)
    bm = _round_up(pl.cdiv(rows8, n_tiles), 8)       # divisor-ish bm -> minimal pad
    padded_B = n_tiles * bm

    x_in = x
    if padded_B != B or dpad:
        x_in = jnp.pad(x, ((0, padded_B - B), (0, dpad)))

    cost = pl.CostEstimate(
        flops=2 * padded_B * Dp * (2 * Dp),
        transcendentals=2 * padded_B * Dp,                 # tanh + exp per element
        bytes_accessed=int(padded_B * Dp * (x_item + out_item) + w_bytes + b_bytes),
    )

    kernel = functools.partial(highway_kernel, d_actual=D)

    def _in_specs(single_buffer_resident):
        x_spec = pl.BlockSpec((bm, Dp), lambda i: (i, 0))
        if single_buffer_resident:
            w_spec = pl.BlockSpec((Dp, 2 * Dp), lambda i: (0, 0),
                                  pipeline_mode=pl.Buffered(1))
            b_spec = pl.BlockSpec((1, 2 * Dp), lambda i: (0, 0),
                                  pipeline_mode=pl.Buffered(1))
        else:
            w_spec = pl.BlockSpec((Dp, 2 * Dp), lambda i: (0, 0))
            b_spec = pl.BlockSpec((1, 2 * Dp), lambda i: (0, 0))
        return [x_spec, w_spec, b_spec]

    def _run(single_buffer_resident):
        return pl.pallas_call(
            kernel,
            out_shape=jax.ShapeDtypeStruct((padded_B, Dp), out_dtype),
            grid_spec=pltpu.PrefetchScalarGridSpec(
                num_scalar_prefetch=0,
                grid=(padded_B // bm,),
                in_specs=_in_specs(single_buffer_resident),
                out_specs=pl.BlockSpec((bm, Dp), lambda i: (i, 0)),
            ),
            compiler_params=pltpu.CompilerParams(
                dimension_semantics=("parallel",),    # shard batch tiles over 2 TCs on v7x
                vmem_limit_bytes=int(vmem_budget),
            ),
            cost_estimate=cost,
        )(x_in, w_fused, b_fused)

    try:
        # Resident weight/bias single-buffered: constant index_map means a second
        # buffer is pure VMEM waste (matters at large D on v7x).
        out = _run(True)
    except Exception:
        # Fallback for jax builds that reject pipeline_mode on top-level BlockSpecs.
        out = _run(False)

    if padded_B != B or dpad:
        out = out[:B, :D]
    return out


def highway_mlp_ref(x, w_h, b_h, w_g, b_g):
    h = jnp.tanh(x @ w_h + b_h)
    g = jax.nn.softmax(x @ w_g + b_g, axis=-1)
    return h * g + (1.0 - g) * x


if __name__ == "__main__":
    input_size = 32   # feature dim D (kernel pads it to 128 lanes internally)
    batch = 16
    gate_bias = -2.0

    key = jax.random.PRNGKey(0)
    kx, kwh, kbh, kwg = jax.random.split(key, 4)

    # Deterministic parameter init mimicking nn.Linear (uniform +/- 1/sqrt(in)).
    bound = 1.0 / (input_size ** 0.5)
    # PyTorch Linear weight is (out, in); build (out, in) then transpose to (in, out).
    w_h_pt = jax.random.uniform(kwh, (input_size, input_size), jnp.float32, -bound, bound)
    b_h = jax.random.uniform(kbh, (input_size,), jnp.float32, -bound, bound)
    w_g_pt = jax.random.uniform(kwg, (input_size, input_size), jnp.float32, -bound, bound)
    b_g = jnp.full((input_size,), gate_bias, jnp.float32)  # gate_layer.bias.data.fill_(-2)

    w_h = w_h_pt.T  # (in, out)
    w_g = w_g_pt.T  # (in, out)

    x = jax.random.normal(kx, (batch, input_size), jnp.float32)

    out = jax.block_until_ready(highway_mlp(x, w_h, b_h, w_g, b_g))
    ref = highway_mlp_ref(x, w_h, b_h, w_g, b_g)

    assert out.shape == (batch, input_size)
    # Tolerance covers bf16 MXU operands (f32 accumulation) + the approx EUP
    # reciprocal in the softmax denominator.
    assert jnp.allclose(out, ref, atol=5e-3, rtol=5e-3), "mismatch vs JAX reference"

    print("KERNEL_OK")
</pallas_src>

<mosaic_0001>
module attributes {stable_mosaic.version = 11 : i64} {
  func.func @highway_kernel(%arg0: i32, %arg1: memref<8x128xf32, #tpu.memory_space<vmem>>, %arg2: memref<128x256xbf16, #tpu.memory_space<vmem>>, %arg3: memref<1x256xf32, #tpu.memory_space<vmem>>, %arg4: memref<8x128xf32, #tpu.memory_space<vmem>>) attributes {dimension_semantics = [#tpu.dimension_semantics<parallel>], iteration_bounds = array<i64: 2>, scalar_prefetch = 0 : i64, scratch_operands = 0 : i64, tpu.core_type = #tpu.core_type<tc>, window_params = [{transform_indices = @transform_0, window_bounds = array<i64: 8, 128>}, {pipeline_mode = #tpu.pipeline_mode<synchronous>, transform_indices = @transform_1, window_bounds = array<i64: 128, 256>}, {pipeline_mode = #tpu.pipeline_mode<synchronous>, transform_indices = @transform_2, window_bounds = array<i64: 1, 256>}, {transform_indices = @transform_3, window_bounds = array<i64: 8, 128>}]} {
    %c0 = arith.constant 0 : index
    %c0_0 = arith.constant 0 : index
    %0 = vector.load %arg1[%c0, %c0_0] : memref<8x128xf32, #tpu.memory_space<vmem>>, vector<8x128xf32>
    %c0_1 = arith.constant 0 : index
    %c0_2 = arith.constant 0 : index
    %1 = vector.load %arg2[%c0_1, %c0_2] : memref<128x256xbf16, #tpu.memory_space<vmem>>, vector<128x256xbf16>
    %2 = arith.truncf %0 : vector<8x128xf32> to vector<8x128xbf16>
    %cst = arith.constant dense<0.000000e+00> : vector<8x256xf32>
    %3 = tpu.matmul %2, %1, %cst {dimension_numbers = #tpu.dot_dimension_numbers<[1], [0], [0], [1], [0, 0, 1, 1], [], []>} : vector<8x128xbf16>, vector<128x256xbf16>, vector<8x256xf32> -> vector<8x256xf32>
    %c0_3 = arith.constant 0 : index
    %c0_4 = arith.constant 0 : index
    %4 = vector.load %arg3[%c0_3, %c0_4] : memref<1x256xf32, #tpu.memory_space<vmem>>, vector<1x256xf32>
    %5 = vector.broadcast %4 : vector<1x256xf32> to vector<8x256xf32>
    %6 = arith.addf %3, %5 : vector<8x256xf32>
    %7 = vector.extract_strided_slice %6 {offsets = [0, 0], sizes = [8, 128], strides = [1, 1]} : vector<8x256xf32> to vector<8x128xf32>
    %8 = math.tanh %7 : vector<8x128xf32>
    %9 = vector.extract_strided_slice %6 {offsets = [0, 128], sizes = [8, 128], strides = [1, 1]} : vector<8x256xf32> to vector<8x128xf32>
    %10 = tpu.iota {dimensions = array<i32: 1>} : vector<8x128xi32>
    %c32_i32 = arith.constant 32 : i32
    %11 = vector.broadcast %c32_i32 : i32 to vector<8x128xi32>
    %12 = arith.cmpi slt, %10, %11 : vector<8x128xi32>
    %cst_5 = arith.constant 0xFF800000 : f32
    %13 = vector.broadcast %cst_5 : f32 to vector<8x128xf32>
    %14 = arith.select %12, %9, %13 : vector<8x128xi1>, vector<8x128xf32>
    %cst_6 = arith.constant dense<0xFF800000> : vector<8xf32>
    %15 = vector.multi_reduction <maximumf>, %14, %cst_6 [1] : vector<8x128xf32> to vector<8xf32>
    %16 = vector.shape_cast %15 : vector<8xf32> to vector<8x1xf32>
    %17 = vector.broadcast %16 : vector<8x1xf32> to vector<8x128xf32>
    %18 = arith.subf %14, %17 : vector<8x128xf32>
    %19 = math.exp %18 : vector<8x128xf32>
    %cst_7 = arith.constant dense<0.000000e+00> : vector<8xf32>
    %20 = vector.multi_reduction <add>, %19, %cst_7 [1] : vector<8x128xf32> to vector<8xf32>
    %21 = vector.shape_cast %20 : vector<8xf32> to vector<8x1xf32>
    %22 = tpu.reciprocal %21 {approx = true} : vector<8x1xf32> -> vector<8x1xf32>
    %23 = vector.broadcast %22 : vector<8x1xf32> to vector<8x128xf32>
    %24 = arith.mulf %19, %23 : vector<8x128xf32>
    %25 = arith.subf %8, %0 : vector<8x128xf32>
    %26 = arith.mulf %24, %25 : vector<8x128xf32>
    %27 = arith.addf %0, %26 : vector<8x128xf32>
    %c0_8 = arith.constant 0 : index
    %c0_9 = arith.constant 0 : index
    %28 = vector.load %arg4[%c0_8, %c0_9] : memref<8x128xf32, #tpu.memory_space<vmem>>, vector<8x128xf32>
    tpu.vector_store %arg4[%c0_8, %c0_9], %27 {strides = array<i32>} : memref<8x128xf32, #tpu.memory_space<vmem>>, vector<8x128xf32>,
    return
  }
  func.func @transform_0(%arg0: i32) -> (i32, i32) {
    %c0_i32 = arith.constant 0 : i32
    %c0_i32_0 = arith.constant 0 : i32
    return %arg0, %c0_i32 : i32, i32
  }
  func.func @transform_1(%arg0: i32) -> (i32, i32) {
    %c0_i32 = arith.constant 0 : i32
    %c0_i32_0 = arith.constant 0 : i32
    %c0_i32_1 = arith.constant 0 : i32
    return %c0_i32, %c0_i32_0 : i32, i32
  }
  func.func @transform_2(%arg0: i32) -> (i32, i32) {
    %c0_i32 = arith.constant 0 : i32
    %c0_i32_0 = arith.constant 0 : i32
    %c0_i32_1 = arith.constant 0 : i32
    return %c0_i32, %c0_i32_0 : i32, i32
  }
  func.func @transform_3(%arg0: i32) -> (i32, i32) {
    %c0_i32 = arith.constant 0 : i32
    %c0_i32_0 = arith.constant 0 : i32
    return %arg0, %c0_i32 : i32, i32
  }
}

module attributes {stable_mosaic.version = 11 : i64} {
  func.func @highway_kernel(%arg0: i32, %arg1: memref<8x128xf32, #tpu.memory_space<vmem>>, %arg2: memref<128x256xbf16, #tpu.memory_space<vmem>>, %arg3: memref<1x256xf32, #tpu.memory_space<vmem>>, %arg4: memref<8x128xf32, #tpu.memory_space<vmem>>) attributes {dimension_semantics = [#tpu.dimension_semantics<parallel>], iteration_bounds = array<i64: 2>, scalar_prefetch = 0 : i64, scratch_operands = 0 : i64, tpu.core_type = #tpu.core_type<tc>, window_params = [{transform_indices = @transform_0, window_bounds = array<i64: 8, 128>}, {pipeline_mode = #tpu.pipeline_mode<synchronous>, transform_indices = @transform_1, window_bounds = array<i64: 128, 256>}, {pipeline_mode = #tpu.pipeline_mode<synchronous>, transform_indices = @transform_2, window_bounds = array<i64: 1, 256>}, {transform_indices = @transform_3, window_bounds = array<i64: 8, 128>}]} {
    %c0 = arith.constant 0 : index
    %c0_0 = arith.constant 0 : index
    %0 = vector.load %arg1[%c0, %c0_0] : memref<8x128xf32, #tpu.memory_space<vmem>>, vector<8x128xf32>
    %c0_1 = arith.constant 0 : index
    %c0_2 = arith.constant 0 : index
    %1 = vector.load %arg2[%c0_1, %c0_2] : memref<128x256xbf16, #tpu.memory_space<vmem>>, vector<128x256xbf16>
    %2 = arith.truncf %0 : vector<8x128xf32> to vector<8x128xbf16>
    %cst = arith.constant dense<0.000000e+00> : vector<8x256xf32>
    %3 = tpu.matmul %2, %1, %cst {dimension_numbers = #tpu.dot_dimension_numbers<[1], [0], [0], [1], [0, 0, 1, 1], [], []>} : vector<8x128xbf16>, vector<128x256xbf16>, vector<8x256xf32> -> vector<8x256xf32>
    %c0_3 = arith.constant 0 : index
    %c0_4 = arith.constant 0 : index
    %4 = vector.load %arg3[%c0_3, %c0_4] : memref<1x256xf32, #tpu.memory_space<vmem>>, vector<1x256xf32>
    %5 = vector.broadcast %4 : vector<1x256xf32> to vector<8x256xf32>
    %6 = arith.addf %3, %5 : vector<8x256xf32>
    %7 = vector.extract_strided_slice %6 {offsets = [0, 0], sizes = [8, 128], strides = [1, 1]} : vector<8x256xf32> to vector<8x128xf32>
    %8 = math.tanh %7 : vector<8x128xf32>
    %9 = vector.extract_strided_slice %6 {offsets = [0, 128], sizes = [8, 128], strides = [1, 1]} : vector<8x256xf32> to vector<8x128xf32>
    %10 = tpu.iota {dimensions = array<i32: 1>} : vector<8x128xi32>
    %c32_i32 = arith.constant 32 : i32
    %11 = vector.broadcast %c32_i32 : i32 to vector<8x128xi32>
    %12 = arith.cmpi slt, %10, %11 : vector<8x128xi32>
    %cst_5 = arith.constant 0xFF800000 : f32
    %13 = vector.broadcast %cst_5 : f32 to vector<8x128xf32>
    %14 = arith.select %12, %9, %13 : vector<8x128xi1>, vector<8x128xf32>
    %cst_6 = arith.constant dense<0xFF800000> : vector<8xf32>
    %15 = vector.multi_reduction <maximumf>, %14, %cst_6 [1] : vector<8x128xf32> to vector<8xf32>
    %16 = vector.shape_cast %15 : vector<8xf32> to vector<8x1xf32>
    %17 = vector.broadcast %16 : vector<8x1xf32> to vector<8x128xf32>
    %18 = arith.subf %14, %17 : vector<8x128xf32>
    %19 = math.exp %18 : vector<8x128xf32>
    %cst_7 = arith.constant dense<0.000000e+00> : vector<8xf32>
    %20 = vector.multi_reduction <add>, %19, %cst_7 [1] : vector<8x128xf32> to vector<8xf32>
    %21 = vector.shape_cast %20 : vector<8xf32> to vector<8x1xf32>
    %22 = tpu.reciprocal %21 {approx = true} : vector<8x1xf32> -> vector<8x1xf32>
    %23 = vector.broadcast %22 : vector<8x1xf32> to vector<8x128xf32>
    %24 = arith.mulf %19, %23 : vector<8x128xf32>
    %25 = arith.subf %8, %0 : vector<8x128xf32>
    %26 = arith.mulf %24, %25 : vector<8x128xf32>
    %27 = arith.addf %0, %26 : vector<8x128xf32>
    %c0_8 = arith.constant 0 : index
    %c0_9 = arith.constant 0 : index
    %28 = vector.load %arg4[%c0_8, %c0_9] : memref<8x128xf32, #tpu.memory_space<vmem>>, vector<8x128xf32>
    tpu.vector_store %arg4[%c0_8, %c0_9], %27 {strides = array<i32>} : memref<8x128xf32, #tpu.memory_space<vmem>>, vector<8x128xf32>,
    return
  }
  func.func @transform_0(%arg0: i32) -> (i32, i32) {
    %c0_i32 = arith.constant 0 : i32
    %c0_i32_0 = arith.constant 0 : i32
    return %arg0, %c0_i32 : i32, i32
  }
  func.func @transform_1(%arg0: i32) -> (i32, i32) {
    %c0_i32 = arith.constant 0 : i32
    %c0_i32_0 = arith.constant 0 : i32
    %c0_i32_1 = arith.constant 0 : i32
    return %c0_i32, %c0_i32_0 : i32, i32
  }
  func.func @transform_2(%arg0: i32) -> (i32, i32) {
    %c0_i32 = arith.constant 0 : i32
    %c0_i32_0 = arith.constant 0 : i32
    %c0_i32_1 = arith.constant 0 : i32
    return %c0_i32, %c0_i32_0 : i32, i32
  }
  func.func @transform_3(%arg0: i32) -> (i32, i32) {
    %c0_i32 = arith.constant 0 : i32
    %c0_i32_0 = arith.constant 0 : i32
    return %arg0, %c0_i32 : i32, i32
  }
}

</mosaic_0001>

<bundles_post_ra>
// kernel: tpu_custom_call.1
= control target key start
LH: loop header
LB: loop body
LE: loop exit
PB: predicated region body
PF: predicated region fallthrough
CT: control target
= control target key end

     0   :  { %8 = vsyncpa [#allocation3], 0  ;;  %s987_s0 = inlined_call_operand.hbm [shape: f32[16,128], index: 0, kind: input, shape index: {}]   ;;  %s988_s1 = inlined_call_operand.hbm [shape: bf16[128,256], index: 1, kind: input, shape index: {}]   ;;  %s989_s2 = inlined_call_operand.hbm [shape: f32[1,256], index: 2, kind: input, shape index: {}]   ;;  %s990_s3 = inlined_call_operand.hbm [shape: f32[16,128], index: 3, kind: output, shape index: {}]  }
   0x1   :  { %10 = vsyncpa [#allocation3 + $0x1], 0 }
   0x2   :  { %11 = vsyncpa [#allocation6], 0 }
   0x3   :  { %12 = vsyncpa [#allocation4], 0 }
   0x4   :  { %14 = vsyncpa [#allocation4 + $0x1], 0  ;;  %s829_s12 = smov 0   ;;  %s831_s13 = smov 0  }
   0x5   :  { %s833_s14 = smov 0   ;;  %s835_s15 = smov 0  }
   0x6 LB: > { %s130_s18 = sshll.u32 %s988_s1, 4  ;;  %s853_s19 = sadd.s32 4294967295, %s803_s15   ;;  %s803_s15 = sphi %s835_s15, %s1001_s15   ;;  %s799_s14 = sphi %s833_s14, %s1000_s14   ;;  %s795_s13 = sphi %s831_s13, %s999_s13   ;;  %s791_s12 = sphi %s829_s12, %s998_s12   ;;  %s131_s18 = int_to_ptr.hbm [resolvable:$true] %s130_s18 }
   0x7   : > { %p473_p0 = scmp.ge.s32.totalorder %s803_s15, 1  ;;  %p41_p1 = scmp.eq.s32.totalorder %s853_s19, 0 }
   0x8   : > { %p119_p2 = scmp.lt.s32.totalorder %s803_s15, 3  ;;  %s805_s21 = smov [#allocation5]  }
   0x9   : > { %s132_s22 = sshll.u32 %s805_s21, 4  ;;  %s145_s25 = sshll.u32 %s989_s2, 4  ;;  %s133_s22 = int_to_ptr.vmem [resolvable:$true] %s132_s22  ;;  %s146_s25 = int_to_ptr.hbm [resolvable:$true] %s145_s25 }
   0xa   : > { %p858_p3 = pnand %p473_p0, %p119_p2  ;;  %s806_s26 = smov [#allocation7]  }
   0xb   : > { %s147_s27 = sshll.u32 %s806_s26, 4  ;;  %s807_s28 = smov 128   ;;  %s148_s27 = int_to_ptr.vmem [resolvable:$true] %s147_s27 }
   0xc   : > { %p580_p4 = pneg %p858_p3  ;;  %s808_s29 = smov 8  }
   0xd   : > { %s472_s30 = sadd.s32 4294967294, %s803_s15   ;;  %s872_s4 = sadd.s32 1, %s803_s15  }
   0xe   : > { %p581_p6 = pnand %p580_p4, %p41_p1  ;;  %s24_s5 = ssub.s32 %s803_s15, %s872_s4 }
   0xf   : > { %s27_s6 = sadd.s32 1, %s799_s14  ;;  %p25_p7 = scmp.eq.s32.totalorder %s24_s5, 0 }
  0x10   : > { %583 = dma.hbm_to_vmem [thread:$0]  (!%p581_p6), %s131_s18, 2048, %s133_s22, [#allocation6], %s807_s28, %s807_s28, %s808_s29  }
  0x11   : > { %586 = dma.hbm_to_vmem [thread:$0]  (!%p581_p6), %s146_s25, 32, %s148_s27, [#allocation6]  }
  0x12   : > { %p34_p8 = scmp.ne.s32.totalorder %s799_s14, %s795_s13  ;;  %p35_p9 = scmp.eq.s32.totalorder %s803_s15, 0 }
  0x13   : > { %p40_p10 = scmp.ne.s32.totalorder %s795_s13, %s791_s12  ;;  %p106_p13 = scmp.eq.s32.totalorder %s853_s19, 1 }
  0x14   : > { %s883_s7 = scalar_select %p25_p7, %s799_s14, %s27_s6  }
  0x15   : > { %p885_p11 = por %p35_p9, %p34_p8  ;;  %p891_p12 = por %p41_p1, %p40_p10 }
  0x16   : > { %p112_p0 = scmp.eq.s32.totalorder %s472_s30, 1  ;;  %p597_p2 = scmp.lt.s32.totalorder %s803_s15, 2 }
  0x17   : > { %s158_s10 = sand.u32 1, %s799_s14   ;;  %p898_p4 = por %p106_p13, %p34_p8 }
  0x18   : > { %p902_p6 = por %p112_p0, %p40_p10  ;;  %s477_s17 = sshll.u32 %s158_s10, 3 }
  0x19   : > { %s478_s18 = sshll.u32 %s803_s15, 3  ;;  %s162_s24 = scalar_lea.vmem [#allocation2], %s477_s17 }
  0x1a   : > { %s166_s23 = scalar_lea.hbm %s987_s0, %s478_s18  ;;  %s170_s25 = sshll.u32 %s162_s24, 4  ;;  %s171_s25 = int_to_ptr.vmem [resolvable:$true] %s170_s25 }
  0x1b   : > { %s168_s26 = sshll.u32 %s166_s23, 4  ;;  %p912_p7 = pnand %p597_p2, %p885_p11  ;;  %s169_s26 = int_to_ptr.hbm [resolvable:$true] %s168_s26 }
  0x1c   : > { %s159_s28 = scalar_lea.sflag [#allocation3], %s158_s10  ;;  %s703_s29 = sshra.s32 %s169_s26, 4  ;;  %s704_s29 = int_to_ptr.hbm [resolvable:$true] %s703_s29 }
  0x1d   : > { %s705_s30 = scalar_lea.hbm %s704_s29, 8  ;;  %p707_p9 = pneg %p912_p7 }
  0x1e   : > { %p706_p8 = scmp.ne.s32.totalorder %s704_s29, %s705_s30  ;;  %s710_s17 = scalar_lea.hbm %s987_s0, 16 }
  0x1f   : > { %p711_p11 = scmp.lt.s32.totalorder %s704_s29, %s987_s0  ;;  %p712_p0 = scmp.lt.s32.totalorder %s710_s17, %s705_s30 }
  0x20   : > { %p708_p10 = pnand %p707_p9, %p706_p8 }
  0x21   : > { %p713_p2 = por %p712_p0, %p711_p11 }
  0x22   : > { %p709_p13 = pneg %p708_p10 }
  0x24   : > { %p714_p5 = pnand %p713_p2, %p709_p13 }
  0x26   : > { %717 = shalt.err (!%p714_p5)
}
  0x27   : > { %590 = dma.hbm_to_vmem [thread:$0]  (!%p912_p7), %s169_s26, 128, %s171_s25, %s159_s28  }
  0x28   : > { %179 = sbr.rel (%p858_p3) target bundleno = 470 (0x1d6), region = 32  ;;  %s929_s10 = sand.u32 (!%p858_p3), 1, %s795_s13  }
  0x29   : > { %s480_s21 = sshll.u32 (!%p858_p3), %s929_s10, 3  ;;  %s182_s22 = scalar_lea.sflag (!%p858_p3), [#allocation3], %s929_s10 }
  0x2a   : > { %s935_s23 = scalar_lea.vmem (!%p858_p3), [#allocation2], %s480_s21 }
  0x2d   : > { %778 = dma.done.wait (%p891_p12), %s182_s22, 128  }
  0x2e   : > { %780 = vsyncadd (%p891_p12), %s182_s22, 4294967168 }
  0x2f   : > { %782 = dma.done.wait (%p41_p1), [#allocation6], 2080  }
  0x30   : > { %784 = vsyncadd (%p41_p1), [#allocation6], 4294965216  ;;  %v566_v0 = vld [vmem:[#allocation5 + $0x74] sm:$0xf]  ;;  %v544_v1 = vld [vmem:[#allocation5 + $0x78] sm:$0xf0]  ;;  %v350_v41 = vlaneseq }
  0x31   : > { %v564_v2 = vld [vmem:[#allocation5 + $0x64] sm:$0xf]  ;;  %v547_v3 = vor.u32 %v566_v0, %v544_v1  ;;  %v536_v4 = vld [vmem:[#allocation5 + $0x68] sm:$0xf0]  ;;  %v562_v6 = vld [vmem:[#allocation5 + $0x54] sm:$0xf] }
  0x32   : > { %v539_v5 = vor.u32 %v564_v2, %v536_v4  ;;  %v528_v7 = vld [vmem:[#allocation5 + $0x58] sm:$0xf0]  ;;  %v560_v9 = vld [vmem:[#allocation5 + $0x44] sm:$0xf]  ;;  %v520_v10 = vld [vmem:[#allocation5 + $0x48] sm:$0xf0] }
  0x33   : > { %336 = vmatpush.bf16.msra.mxu1 %v547_v3  ;;  %v531_v8 = vor.u32 %v562_v6, %v528_v7  ;;  %v523_v11 = vor.u32 %v560_v9, %v520_v10  ;;  %v558_v12 = vld [vmem:[#allocation5 + $0x34] sm:$0xf]  ;;  %v512_v13 = vld [vmem:[#allocation5 + $0x38] sm:$0xf0]  ;;  %v556_v15 = vld [vmem:[#allocation5 + $0x24] sm:$0xf] }
  0x34   : > { %v515_v14 = vor.u32 %v558_v12, %v512_v13  ;;  %v504_v16 = vld [vmem:[#allocation5 + $0x28] sm:$0xf0]  ;;  %v554_v18 = vld [vmem:[#allocation5 + $0x14] sm:$0xf]  ;;  %v496_v19 = vld [vmem:[#allocation5 + $0x18] sm:$0xf0] }
  0x35   : > { %v507_v17 = vor.u32 %v556_v15, %v504_v16  ;;  %v499_v20 = vor.u32 %v554_v18, %v496_v19  ;;  %v552_v21 = vld [vmem:[#allocation5 + $0x4] sm:$0xf]  ;;  %v488_v22 = vld [vmem:[#allocation5 + $0x8] sm:$0xf0]  ;;  %v946_v24 = vld [vmem:[%s935_s23] sm:$0xff]  ;;  %v351_v46 = vand.u32 127, %v350_v41 }
  0x36   : > { %v491_v23 = vor.u32 %v552_v21, %v488_v22  ;;  %v236_v25 = vpack.c.bf16 %v946_v24, %v946_v24  ;;  %v542_v26 = vld [vmem:[#allocation5 + $0x70] sm:$0xf]  ;;  %v567_v27 = vld [vmem:[#allocation5 + $0x74] sm:$0xf0]  ;;  %v534_v28 = vld [vmem:[#allocation5 + $0x60] sm:$0xf] }
  0x37   : > { %337 = vmatpush.bf16.msra.mxu1 %v539_v5  ;;  %v543_v29 = vor.u32 %v567_v27, %v542_v26  ;;  %v565_v30 = vld [vmem:[#allocation5 + $0x64] sm:$0xf0]  ;;  %v526_v32 = vld [vmem:[#allocation5 + $0x50] sm:$0xf]  ;;  %v563_v33 = vld [vmem:[#allocation5 + $0x54] sm:$0xf0] }
  0x38   : > { %v535_v31 = vor.u32 %v565_v30, %v534_v28  ;;  %v527_v34 = vor.u32 %v563_v33, %v526_v32  ;;  %v518_v35 = vld [vmem:[#allocation5 + $0x40] sm:$0xf]  ;;  %v561_v36 = vld [vmem:[#allocation5 + $0x44] sm:$0xf0]  ;;  %v510_v38 = vld [vmem:[#allocation5 + $0x30] sm:$0xf] }
  0x39   : > { %323 = vmatpush.bf16.msra.mxu0 %v543_v29  ;;  %v519_v37 = vor.u32 %v561_v36, %v518_v35  ;;  %v559_v39 = vld [vmem:[#allocation5 + $0x34] sm:$0xf0]  ;;  %v502_v42 = vld [vmem:[#allocation5 + $0x20] sm:$0xf]  ;;  %v557_v43 = vld [vmem:[#allocation5 + $0x24] sm:$0xf0] }
  0x3a   : > { %v511_v40 = vor.u32 %v559_v39, %v510_v38  ;;  %v237_v44 = vld [vmem:[#allocation7] sm:$0x3]  ;;  %v503_v45 = vor.u32 %v557_v43, %v502_v42  ;;  %v494_v47 = vld [vmem:[#allocation5 + $0x10] sm:$0xf]  ;;  %v555_v48 = vld [vmem:[#allocation5 + $0x14] sm:$0xf0] }
  0x3b   : > { %338 = vmatpush.bf16.msra.mxu1 %v531_v8  ;;  %v240_v49 = vperm.slane %v237_v44, 1  ;;  %v495_v50 = vor.u32 %v555_v48, %v494_v47  ;;  %vm352_vm0 = vcmp.lt.s32.totalorder %v351_v46, 32  ;;  %v486_v52 = vld [vmem:[#allocation5] sm:$0xf]  ;;  %v553_v53 = vld [vmem:[#allocation5 + $0x4] sm:$0xf0] }
  0x3c   : > { %v487_v56 = vor.u32 %v553_v53, %v486_v52  ;;  %v239_v0 = vperm.slane %v237_v44, 0  ;;  %s549_s20 = sshll.u32 %s853_s19, 3  ;;  %s218_s26 = scalar_lea.vmem [#allocation8], %s480_s21 }
  0x3d   : > { %324 = vmatpush.bf16.msra.mxu0 %v535_v31  ;;  %s378_s25 = scalar_lea.hbm %s990_s3, %s549_s20  ;;  %s380_s27 = sshll.u32 %s218_s26, 4  ;;  %s381_s27 = int_to_ptr.vmem [resolvable:$true] %s380_s27 }
  0x3e   : > { %s382_s28 = sshll.u32 %s378_s25, 4  ;;  %s368_s19 = scalar_lea.sflag [#allocation4], %s929_s10  ;;  %s383_s28 = int_to_ptr.hbm [resolvable:$true] %s382_s28 }
  0x3f   : > { %339 = vmatpush.bf16.msra.mxu1 %v523_v11  ;;  %s747_s29 = sshra.s32 %s383_s28, 4  ;;  %s753_s17 = scalar_lea.hbm %s990_s3, 16  ;;  %s748_s29 = int_to_ptr.hbm [resolvable:$true] %s747_s29 }
  0x40   : > { %s749_s30 = scalar_lea.hbm %s748_s29, 8  ;;  %p754_p12 = scmp.lt.s32.totalorder %s748_s29, %s990_s3 }
  0x41   : > { %325 = vmatpush.bf16.msra.mxu0 %v527_v34  ;;  %p750_p1 = scmp.ne.s32.totalorder %s748_s29, %s749_s30  ;;  %p755_p7 = scmp.lt.s32.totalorder %s753_s17, %s749_s30 }
  0x43   : > { %340 = vmatpush.bf16.msra.mxu1 %v515_v14  ;;  %p751_p3 = pnand %p750_p1, %p898_p4  ;;  %p756_p8 = por %p755_p7, %p754_p12 }
  0x45   : > { %326 = vmatpush.bf16.msra.mxu0 %v519_v37  ;;  %p752_p5 = pneg %p751_p3 }
  0x47   : > { %341 = vmatpush.bf16.msra.mxu1 %v507_v17  ;;  %p757_p9 = pnand %p756_p8, %p752_p5 }
  0x49   : > { %327 = vmatpush.bf16.msra.mxu0 %v511_v40 }
  0x4b   : > { %342 = vmatpush.bf16.msra.mxu1 %v499_v20 }
  0x4d   : > { %328 = vmatpush.bf16.msra.mxu0 %v503_v45 }
  0x4f   : > { %343 = vmatpush.bf16.msra.mxu1 %v491_v23 }
  0x51   : > { %329 = vmatpush.bf16.msra.mxu0 %v495_v50 }
  0x52   : > { %344 = vmatmul.bf16.vlgmr.msra.gmra.mxu1 %v236_v25 }
  0x55   : > { %330 = vmatpush.bf16.msra.mxu0 %v487_v56 }
  0x58   : > { %331 = vmatmul.bf16.vlgmr.msra.gmra.mxu0 %v236_v25 }
  0xcf   : > { %v345_v51 = vpop.f32.mrf.mxu1 }
  0xd0   : > { %v346_v54 = vadd.f32 %v345_v51, %v240_v49 }
  0xd2   : > { %v353_v55 = vsel %vm352_vm0, %v346_v54, -inf }
  0xd3   : > { %354 = vmax.xlane.f32.xlu0 %v353_v55 }
  0xd5   : > { %v332_v62 = vpop.f32.mrf.mxu0 }
  0xd6   : > { %v333_v1 = vadd.f32 %v332_v62, %v239_v0 }
  0xd7   : > { %v347_v57 = vpop.f32.mrf.mxu1 }
  0xdd   : > { %v334_v63 = vpop.f32.mrf.mxu0 }
 0x146   : > { %v355_v58 = vpop.xlane.xlu0 %354 }
 0x147   : > { %v356_v59 = vsub.f32 %v353_v55, %v355_v58 }
 0x149   : > { %v357_v60 = vmul.f32 1.442695, %v356_v59 }
 0x14b   : > { %637 = vpow2.f32 %v357_v60 }
 0x14c   : > { %639 = vtanh.f32 %v333_v1 }
 0x151   : > { %v638_v61 = vpop.eup %637 }
 0x152   : > { %359 = vadd.xlane.f32.xlu0 %v638_v61  ;;  %v640_v3 = vpop.eup %639 }
 0x153   : > { %v363_v4 = vsub.f32 %v640_v3, %v946_v24 }
 0x1c5   : > { %v360_v2 = vpop.xlane.xlu0 %359 }
 0x1c6   : > { %641 = vrcp.f32 %v360_v2 }
 0x1cc   : > { %v642_v5 = vpop.eup %641 }
 0x1cd   : > { %v362_v6 = vmul.f32 %v642_v5, %v638_v61 }
 0x1cf   : > { %v364_v7 = vmul.f32 %v363_v4, %v362_v6 }
 0x1d1   : > { %v365_v8 = vadd.f32 %v364_v7, %v946_v24 }
 0x1d3   : > { %366 = vst [vmem:[%s218_s26] sm:$0xff] %v365_v8 }
 0x1d4   : > { %760 = shalt.err (!%p757_p9)
}
 0x1d5   : > { %578 = dma.vmem_to_hbm [thread:$0]  (%p898_p4), %s381_s27, 128, %s383_s28, %s368_s19  }
 0x1d6 PF: > { %s394_s10 = sand.u32 1, %s791_s12   ;;  %p997_p10 = scmp.ge.s32.totalorder %s803_s15, 2 }
 0x1d7   : > { %s395_s21 = scalar_lea.sflag [#allocation4], %s394_s10 }
 0x1d8   : > { %p592_p13 = pnand %p997_p10, %p902_p6 }
 0x1da   : > { %p593_p11 = pneg %p592_p13 }
 0x1dc   : > { %786 = dma.done.wait (%p593_p11), %s395_s21, 128  }
 0x1dd   : > { %788 = vsyncadd (%p593_p11), %s395_s21, 4294967168  ;;  %p17_p0 = scmp.ge.s32.totalorder %s872_s4, 4   ;;  %s998_s12 = smov %s795_s13 }
 0x1de   : > { %s999_s13 = smov %s799_s14  ;;  %s1000_s14 = smov %s883_s7 }
 0x1df   : > { %s1001_s15 = smov %s872_s4  ;;  %19 = sbr.rel (!%p17_p0) target bundleno = 6 (0x6), region = 85 }
 0x1e4   :  { %401 = vsyncpa [#allocation3], 1 }
 0x1e5   :  { %403 = vsyncpa [#allocation3 + $0x1], 1 }
 0x1e6   :  { %404 = vsyncpa [#allocation6], 1 }
 0x1e7   :  { %405 = vsyncpa [#allocation4], 1 }
 0x1e8   :  { %407 = vsyncpa [#allocation4 + $0x1], 1 }

// kernel: tpu_custom_call.1
= control target key start
LH: loop header
LB: loop body
LE: loop exit
PB: predicated region body
PF: predicated region fallthrough
CT: control target
= control target key end

     0   :  { %8 = vsyncpa [#allocation3], 0  ;;  %s987_s0 = inlined_call_operand.hbm [shape: f32[16,128], index: 0, kind: input, shape index: {}]   ;;  %s988_s1 = inlined_call_operand.hbm [shape: bf16[128,256], index: 1, kind: input, shape index: {}]   ;;  %s989_s2 = inlined_call_operand.hbm [shape: f32[1,256], index: 2, kind: input, shape index: {}]   ;;  %s990_s3 = inlined_call_operand.hbm [shape: f32[16,128], index: 3, kind: output, shape index: {}]  }
   0x1   :  { %10 = vsyncpa [#allocation3 + $0x1], 0 }
   0x2   :  { %11 = vsyncpa [#allocation6], 0 }
   0x3   :  { %12 = vsyncpa [#allocation4], 0 }
   0x4   :  { %14 = vsyncpa [#allocation4 + $0x1], 0  ;;  %s829_s12 = smov 0   ;;  %s831_s13 = smov 0  }
   0x5   :  { %s833_s14 = smov 0   ;;  %s835_s15 = smov 0  }
   0x6 LB: > { %s130_s18 = sshll.u32 %s988_s1, 4  ;;  %s853_s19 = sadd.s32 4294967295, %s803_s15   ;;  %s803_s15 = sphi %s835_s15, %s1001_s15   ;;  %s799_s14 = sphi %s833_s14, %s1000_s14   ;;  %s795_s13 = sphi %s831_s13, %s999_s13   ;;  %s791_s12 = sphi %s829_s12, %s998_s12   ;;  %s131_s18 = int_to_ptr.hbm [resolvable:$true] %s130_s18 }
   0x7   : > { %p473_p0 = scmp.ge.s32.totalorder %s803_s15, 1  ;;  %p41_p1 = scmp.eq.s32.totalorder %s853_s19, 0 }
   0x8   : > { %p119_p2 = scmp.lt.s32.totalorder %s803_s15, 3  ;;  %s805_s21 = smov [#allocation5]  }
   0x9   : > { %s132_s22 = sshll.u32 %s805_s21, 4  ;;  %s145_s25 = sshll.u32 %s989_s2, 4  ;;  %s133_s22 = int_to_ptr.vmem [resolvable:$true] %s132_s22  ;;  %s146_s25 = int_to_ptr.hbm [resolvable:$true] %s145_s25 }
   0xa   : > { %p858_p3 = pnand %p473_p0, %p119_p2  ;;  %s806_s26 = smov [#allocation7]  }
   0xb   : > { %s147_s27 = sshll.u32 %s806_s26, 4  ;;  %s807_s28 = smov 128   ;;  %s148_s27 = int_to_ptr.vmem [resolvable:$true] %s147_s27 }
   0xc   : > { %p580_p4 = pneg %p858_p3  ;;  %s808_s29 = smov 8  }
   0xd   : > { %s472_s30 = sadd.s32 4294967294, %s803_s15   ;;  %s872_s4 = sadd.s32 1, %s803_s15  }
   0xe   : > { %p581_p6 = pnand %p580_p4, %p41_p1  ;;  %s24_s5 = ssub.s32 %s803_s15, %s872_s4 }
   0xf   : > { %s27_s6 = sadd.s32 1, %s799_s14  ;;  %p25_p7 = scmp.eq.s32.totalorder %s24_s5, 0 }
  0x10   : > { %583 = dma.hbm_to_vmem [thread:$0]  (!%p581_p6), %s131_s18, 2048, %s133_s22, [#allocation6], %s807_s28, %s807_s28, %s808_s29  }
  0x11   : > { %586 = dma.hbm_to_vmem [thread:$0]  (!%p581_p6), %s146_s25, 32, %s148_s27, [#allocation6]  }
  0x12   : > { %p34_p8 = scmp.ne.s32.totalorder %s799_s14, %s795_s13  ;;  %p35_p9 = scmp.eq.s32.totalorder %s803_s15, 0 }
  0x13   : > { %p40_p10 = scmp.ne.s32.totalorder %s795_s13, %s791_s12  ;;  %p106_p13 = scmp.eq.s32.totalorder %s853_s19, 1 }
  0x14   : > { %s883_s7 = scalar_select %p25_p7, %s799_s14, %s27_s6  }
  0x15   : > { %p885_p11 = por %p35_p9, %p34_p8  ;;  %p891_p12 = por %p41_p1, %p40_p10 }
  0x16   : > { %p112_p0 = scmp.eq.s32.totalorder %s472_s30, 1  ;;  %p597_p2 = scmp.lt.s32.totalorder %s803_s15, 2 }
  0x17   : > { %s158_s10 = sand.u32 1, %s799_s14   ;;  %p898_p4 = por %p106_p13, %p34_p8 }
  0x18   : > { %p902_p6 = por %p112_p0, %p40_p10  ;;  %s477_s17 = sshll.u32 %s158_s10, 3 }
  0x19   : > { %s478_s18 = sshll.u32 %s803_s15, 3  ;;  %s162_s24 = scalar_lea.vmem [#allocation2], %s477_s17 }
  0x1a   : > { %s166_s23 = scalar_lea.hbm %s987_s0, %s478_s18  ;;  %s170_s25 = sshll.u32 %s162_s24, 4  ;;  %s171_s25 = int_to_ptr.vmem [resolvable:$true] %s170_s25 }
  0x1b   : > { %s168_s26 = sshll.u32 %s166_s23, 4  ;;  %p912_p7 = pnand %p597_p2, %p885_p11  ;;  %s169_s26 = int_to_ptr.hbm [resolvable:$true] %s168_s26 }
  0x1c   : > { %s159_s28 = scalar_lea.sflag [#allocation3], %s158_s10  ;;  %s703_s29 = sshra.s32 %s169_s26, 4  ;;  %s704_s29 = int_to_ptr.hbm [resolvable:$true] %s703_s29 }
  0x1d   : > { %s705_s30 = scalar_lea.hbm %s704_s29, 8  ;;  %p707_p9 = pneg %p912_p7 }
  0x1e   : > { %p706_p8 = scmp.ne.s32.totalorder %s704_s29, %s705_s30  ;;  %s710_s17 = scalar_lea.hbm %s987_s0, 16 }
  0x1f   : > { %p711_p11 = scmp.lt.s32.totalorder %s704_s29, %s987_s0  ;;  %p712_p0 = scmp.lt.s32.totalorder %s710_s17, %s705_s30 }
  0x20   : > { %p708_p10 = pnand %p707_p9, %p706_p8 }
  0x21   : > { %p713_p2 = por %p712_p0, %p711_p11 }
  0x22   : > { %p709_p13 = pneg %p708_p10 }
  0x24   : > { %p714_p5 = pnand %p713_p2, %p709_p13 }
  0x26   : > { %717 = shalt.err (!%p714_p5)
}
  0x27   : > { %590 = dma.hbm_to_vmem [thread:$0]  (!%p912_p7), %s169_s26, 128, %s171_s25, %s159_s28  }
  0x28   : > { %179 = sbr.rel (%p858_p3) target bundleno = 470 (0x1d6), region = 32  ;;  %s929_s10 = sand.u32 (!%p858_p3), 1, %s795_s13  }
  0x29   : > { %s480_s21 = sshll.u32 (!%p858_p3), %s929_s10, 3  ;;  %s182_s22 = scalar_lea.sflag (!%p858_p3), [#allocation3], %s929_s10 }
  0x2a   : > { %s935_s23 = scalar_lea.vmem (!%p858_p3), [#allocation2], %s480_s21 }
  0x2d   : > { %778 = dma.done.wait (%p891_p12), %s182_s22, 128  }
  0x2e   : > { %780 = vsyncadd (%p891_p12), %s182_s22, 4294967168 }
  0x2f   : > { %782 = dma.done.wait (%p41_p1), [#allocation6], 2080  }
  0x30   : > { %784 = vsyncadd (%p41_p1), [#allocation6], 4294965216  ;;  %v566_v0 = vld [vmem:[#allocation5 + $0x74] sm:$0xf]  ;;  %v544_v1 = vld [vmem:[#allocation5 + $0x78] sm:$0xf0]  ;;  %v350_v41 = vlaneseq }
  0x31   : > { %v564_v2 = vld [vmem:[#allocation5 + $0x64] sm:$0xf]  ;;  %v547_v3 = vor.u32 %v566_v0, %v544_v1  ;;  %v536_v4 = vld [vmem:[#allocation5 + $0x68] sm:$0xf0]  ;;  %v562_v6 = vld [vmem:[#allocation5 + $0x54] sm:$0xf] }
  0x32   : > { %v539_v5 = vor.u32 %v564_v2, %v536_v4  ;;  %v528_v7 = vld [vmem:[#allocation5 + $0x58] sm:$0xf0]  ;;  %v560_v9 = vld [vmem:[#allocation5 + $0x44] sm:$0xf]  ;;  %v520_v10 = vld [vmem:[#allocation5 + $0x48] sm:$0xf0] }
  0x33   : > { %336 = vmatpush.bf16.msra.mxu1 %v547_v3  ;;  %v531_v8 = vor.u32 %v562_v6, %v528_v7  ;;  %v523_v11 = vor.u32 %v560_v9, %v520_v10  ;;  %v558_v12 = vld [vmem:[#allocation5 + $0x34] sm:$0xf]  ;;  %v512_v13 = vld [vmem:[#allocation5 + $0x38] sm:$0xf0]  ;;  %v556_v15 = vld [vmem:[#allocation5 + $0x24] sm:$0xf] }
  0x34   : > { %v515_v14 = vor.u32 %v558_v12, %v512_v13  ;;  %v504_v16 = vld [vmem:[#allocation5 + $0x28] sm:$0xf0]  ;;  %v554_v18 = vld [vmem:[#allocation5 + $0x14] sm:$0xf]  ;;  %v496_v19 = vld [vmem:[#allocation5 + $0x18] sm:$0xf0] }
  0x35   : > { %v507_v17 = vor.u32 %v556_v15, %v504_v16  ;;  %v499_v20 = vor.u32 %v554_v18, %v496_v19  ;;  %v552_v21 = vld [vmem:[#allocation5 + $0x4] sm:$0xf]  ;;  %v488_v22 = vld [vmem:[#allocation5 + $0x8] sm:$0xf0]  ;;  %v946_v24 = vld [vmem:[%s935_s23] sm:$0xff]  ;;  %v351_v46 = vand.u32 127, %v350_v41 }
  0x36   : > { %v491_v23 = vor.u32 %v552_v21, %v488_v22  ;;  %v236_v25 = vpack.c.bf16 %v946_v24, %v946_v24  ;;  %v542_v26 = vld [vmem:[#allocation5 + $0x70] sm:$0xf]  ;;  %v567_v27 = vld [vmem:[#allocation5 + $0x74] sm:$0xf0]  ;;  %v534_v28 = vld [vmem:[#allocation5 + $0x60] sm:$0xf] }
  0x37   : > { %337 = vmatpush.bf16.msra.mxu1 %v539_v5  ;;  %v543_v29 = vor.u32 %v567_v27, %v542_v26  ;;  %v565_v30 = vld [vmem:[#allocation5 + $0x64] sm:$0xf0]  ;;  %v526_v32 = vld [vmem:[#allocation5 + $0x50] sm:$0xf]  ;;  %v563_v33 = vld [vmem:[#allocation5 + $0x54] sm:$0xf0] }
  0x38   : > { %v535_v31 = vor.u32 %v565_v30, %v534_v28  ;;  %v527_v34 = vor.u32 %v563_v33, %v526_v32  ;;  %v518_v35 = vld [vmem:[#allocation5 + $0x40] sm:$0xf]  ;;  %v561_v36 = vld [vmem:[#allocation5 + $0x44] sm:$0xf0]  ;;  %v510_v38 = vld [vmem:[#allocation5 + $0x30] sm:$0xf] }
  0x39   : > { %323 = vmatpush.bf16.msra.mxu0 %v543_v29  ;;  %v519_v37 = vor.u32 %v561_v36, %v518_v35  ;;  %v559_v39 = vld [vmem:[#allocation5 + $0x34] sm:$0xf0]  ;;  %v502_v42 = vld [vmem:[#allocation5 + $0x20] sm:$0xf]  ;;  %v557_v43 = vld [vmem:[#allocation5 + $0x24] sm:$0xf0] }
  0x3a   : > { %v511_v40 = vor.u32 %v559_v39, %v510_v38  ;;  %v237_v44 = vld [vmem:[#allocation7] sm:$0x3]  ;;  %v503_v45 = vor.u32 %v557_v43, %v502_v42  ;;  %v494_v47 = vld [vmem:[#allocation5 + $0x10] sm:$0xf]  ;;  %v555_v48 = vld [vmem:[#allocation5 + $0x14] sm:$0xf0] }
  0x3b   : > { %338 = vmatpush.bf16.msra.mxu1 %v531_v8  ;;  %v240_v49 = vperm.slane %v237_v44, 1  ;;  %v495_v50 = vor.u32 %v555_v48, %v494_v47  ;;  %vm352_vm0 = vcmp.lt.s32.totalorder %v351_v46, 32  ;;  %v486_v52 = vld [vmem:[#allocation5] sm:$0xf]  ;;  %v553_v53 = vld [vmem:[#allocation5 + $0x4] sm:$0xf0] }
  0x3c   : > { %v487_v56 = vor.u32 %v553_v53, %v486_v52  ;;  %v239_v0 = vperm.slane %v237_v44, 0  ;;  %s549_s20 = sshll.u32 %s853_s19, 3  ;;  %s218_s26 = scalar_lea.vmem [#allocation8], %s480_s21 }
  0x3d   : > { %324 = vmatpush.bf16.msra.mxu0 %v535_v31  ;;  %s378_s25 = scalar_lea.hbm %s990_s3, %s549_s20  ;;  %s380_s27 = sshll.u32 %s218_s26, 4  ;;  %s381_s27 = int_to_ptr.vmem [resolvable:$true] %s380_s27 }
  0x3e   : > { %s382_s28 = sshll.u32 %s378_s25, 4  ;;  %s368_s19 = scalar_lea.sflag [#allocation4], %s929_s10  ;;  %s383_s28 = int_to_ptr.hbm [resolvable:$true] %s382_s28 }
  0x3f   : > { %339 = vmatpush.bf16.msra.mxu1 %v523_v11  ;;  %s747_s29 = sshra.s32 %s383_s28, 4  ;;  %s753_s17 = scalar_lea.hbm %s990_s3, 16  ;;  %s748_s29 = int_to_ptr.hbm [resolvable:$true] %s747_s29 }
  0x40   : > { %s749_s30 = scalar_lea.hbm %s748_s29, 8  ;;  %p754_p12 = scmp.lt.s32.totalorder %s748_s29, %s990_s3 }
  0x41   : > { %325 = vmatpush.bf16.msra.mxu0 %v527_v34  ;;  %p750_p1 = scmp.ne.s32.totalorder %s748_s29, %s749_s30  ;;  %p755_p7 = scmp.lt.s32.totalorder %s753_s17, %s749_s30 }
  0x43   : > { %340 = vmatpush.bf16.msra.mxu1 %v515_v14  ;;  %p751_p3 = pnand %p750_p1, %p898_p4  ;;  %p756_p8 = por %p755_p7, %p754_p12 }
  0x45   : > { %326 = vmatpush.bf16.msra.mxu0 %v519_v37  ;;  %p752_p5 = pneg %p751_p3 }
  0x47   : > { %341 = vmatpush.bf16.msra.mxu1 %v507_v17  ;;  %p757_p9 = pnand %p756_p8, %p752_p5 }
  0x49   : > { %327 = vmatpush.bf16.msra.mxu0 %v511_v40 }
  0x4b   : > { %342 = vmatpush.bf16.msra.mxu1 %v499_v20 }
  0x4d   : > { %328 = vmatpush.bf16.msra.mxu0 %v503_v45 }
  0x4f   : > { %343 = vmatpush.bf16.msra.mxu1 %v491_v23 }
  0x51   : > { %329 = vmatpush.bf16.msra.mxu0 %v495_v50 }
  0x52   : > { %344 = vmatmul.bf16.vlgmr.msra.gmra.mxu1 %v236_v25 }
  0x55   : > { %330 = vmatpush.bf16.msra.mxu0 %v487_v56 }
  0x58   : > { %331 = vmatmul.bf16.vlgmr.msra.gmra.mxu0 %v236_v25 }
  0xcf   : > { %v345_v51 = vpop.f32.mrf.mxu1 }
  0xd0   : > { %v346_v54 = vadd.f32 %v345_v51, %v240_v49 }
  0xd2   : > { %v353_v55 = vsel %vm352_vm0, %v346_v54, -inf }
  0xd3   : > { %354 = vmax.xlane.f32.xlu0 %v353_v55 }
  0xd5   : > { %v332_v62 = vpop.f32.mrf.mxu0 }
  0xd6   : > { %v333_v1 = vadd.f32 %v332_v62, %v239_v0 }
  0xd7   : > { %v347_v57 = vpop.f32.mrf.mxu1 }
  0xdd   : > { %v334_v63 = vpop.f32.mrf.mxu0 }
 0x146   : > { %v355_v58 = vpop.xlane.xlu0 %354 }
 0x147   : > { %v356_v59 = vsub.f32 %v353_v55, %v355_v58 }
 0x149   : > { %v357_v60 = vmul.f32 1.442695, %v356_v59 }
 0x14b   : > { %637 = vpow2.f32 %v357_v60 }
 0x14c   : > { %639 = vtanh.f32 %v333_v1 }
 0x151   : > { %v638_v61 = vpop.eup %637 }
 0x152   : > { %359 = vadd.xlane.f32.xlu0 %v638_v61  ;;  %v640_v3 = vpop.eup %639 }
 0x153   : > { %v363_v4 = vsub.f32 %v640_v3, %v946_v24 }
 0x1c5   : > { %v360_v2 = vpop.xlane.xlu0 %359 }
 0x1c6   : > { %641 = vrcp.f32 %v360_v2 }
 0x1cc   : > { %v642_v5 = vpop.eup %641 }
 0x1cd   : > { %v362_v6 = vmul.f32 %v642_v5, %v638_v61 }
 0x1cf   : > { %v364_v7 = vmul.f32 %v363_v4, %v362_v6 }
 0x1d1   : > { %v365_v8 = vadd.f32 %v364_v7, %v946_v24 }
 0x1d3   : > { %366 = vst [vmem:[%s218_s26] sm:$0xff] %v365_v8 }
 0x1d4   : > { %760 = shalt.err (!%p757_p9)
}
 0x1d5   : > { %578 = dma.vmem_to_hbm [thread:$0]  (%p898_p4), %s381_s27, 128, %s383_s28, %s368_s19  }
 0x1d6 PF: > { %s394_s10 = sand.u32 1, %s791_s12   ;;  %p997_p10 = scmp.ge.s32.totalorder %s803_s15, 2 }
 0x1d7   : > { %s395_s21 = scalar_lea.sflag [#allocation4], %s394_s10 }
 0x1d8   : > { %p592_p13 = pnand %p997_p10, %p902_p6 }
 0x1da   : > { %p593_p11 = pneg %p592_p13 }
 0x1dc   : > { %786 = dma.done.wait (%p593_p11), %s395_s21, 128  }
 0x1dd   : > { %788 = vsyncadd (%p593_p11), %s395_s21, 4294967168  ;;  %p17_p0 = scmp.ge.s32.totalorder %s872_s4, 4   ;;  %s998_s12 = smov %s795_s13 }
 0x1de   : > { %s999_s13 = smov %s799_s14  ;;  %s1000_s14 = smov %s883_s7 }
 0x1df   : > { %s1001_s15 = smov %s872_s4  ;;  %19 = sbr.rel (!%p17_p0) target bundleno = 6 (0x6), region = 85 }
 0x1e4   :  { %401 = vsyncpa [#allocation3], 1 }
 0x1e5   :  { %403 = vsyncpa [#allocation3 + $0x1], 1 }
 0x1e6   :  { %404 = vsyncpa [#allocation6], 1 }
 0x1e7   :  { %405 = vsyncpa [#allocation4], 1 }
 0x1e8   :  { %407 = vsyncpa [#allocation4 + $0x1], 1 }

</bundles_post_ra>
